<compile_context>
chip_gen: v7x
topology: tpu7x:2x2x1
jax: 0.10.0
libtpu: 0.0.40
codegen_flags: <defaults>
</compile_context>

<pallas_src>
import functools

import jax
import jax.numpy as jnp
import numpy as np
from jax import lax
from jax.experimental import pallas as pl
from jax.experimental.pallas import tpu as pltpu

NEG_SLOPE = 0.01   # PyTorch LeakyReLU default negative_slope
BN_EPS = 1e-5      # PyTorch BatchNorm2d default eps
LANE = 128


def _leaky(x):
    return jnp.where(x >= 0, x, NEG_SLOPE * x)


def _geometry(h, w):
    """Flat padded-spatial geometry shared by wrapper, packer and kernel."""
    hp, wp = h + 2, w + 2
    lp = hp * wp                       # flattened (H+2)*(W+2) grid
    lpa = -(-lp // LANE) * LANE        # lane-aligned slab width
    return hp, wp, lp, lpa


def _res_spa_kernel(xs_ref, mask_ref, wblk_ref, bnp_ref, o_ref, *, n, c, h, w):
    # xs_ref  : (N*C, LPA) f32   zero-padded input; flattened (H+2)x(W+2) grid in
    #                            lanes [0, LP), zeros in [LP, LPA).
    # mask_ref: (1, LPA)   f32   1.0 at interior spatial lanes, 0.0 on border/tail.
    # wblk_ref: (2, N*C, 9*N*C+1) bf16  block-diagonal im2col weights with a trailing
    #                            bias column, for conv1 / conv2.
    # bnp_ref : (N*C, 4)   f32   per-row BN params [g1, be1, g2, be2].
    # o_ref   : (N*C, LPA) f32   output on the padded grid (border/tail lanes dead;
    #                            the wrapper slices the interior back out).
    wp = w + 2
    nc = n * c
    width = xs_ref.shape[1]
    count = float(n * h * w)
    # tap lane offsets, ordered to match the weight matrix (t = dy*3 + dx)
    deltas = [(dy - 1) * wp + (dx - 1) for dy in range(3) for dx in range(3)]

    xs = xs_ref[...]                              # (NC, LPA) stays resident
    mask = mask_ref[...]                          # (1, LPA)
    bnp = bnp_ref[...]                            # (NC, 4)
    g1, be1 = bnp[:, 0:1], bnp[:, 1:2]
    g2, be2 = bnp[:, 2:3], bnp[:, 3:4]
    ones_row = jnp.ones((1, width), jnp.float32)  # bias tap (folded conv bias)

    def conv3x3(src, wblk):
        # One im2col matmul.  Each 3x3 tap is a uniform lane offset on the flattened
        # padded grid -> an XLU lane rotation of the whole slab (co-issues with
        # VPU/MXU work; no unaligned lane slices / concthrough-copies).  The 8-row
        # f32 pieces are sublane-tile aligned, so the concat is pure vreg stacking;
        # one cast to bf16 afterwards puts the MXU on its native path (f32 accum).
        taps = jnp.concatenate(
            [pltpu.roll(src, shift=(-d) % width, axis=1) if d else src
             for d in deltas] + [ones_row], axis=0)               # (9*NC+1, LPA)
        return jnp.dot(wblk, taps.astype(jnp.bfloat16),
                       preferred_element_type=jnp.float32)        # (NC, LPA) f32

    def batchnorm(y, gamma, beta):
        # Training-mode BN (batch stats, biased variance), one pass: masked sum and
        # sum-of-squares per row, then batch-reduce across the images stacked on the
        # sublane axis with a sublane roll (the wrap brings the other image's rows,
        # so every row ends up holding the batch total -> no re-broadcast needed).
        ym = y * mask
        s = jnp.sum(ym, axis=1, keepdims=True)          # (NC, 1)
        s2 = jnp.sum(ym * y, axis=1, keepdims=True)     # (NC, 1)
        s_tot, s2_tot = s, s2
        for i in range(1, n):
            s_tot = s_tot + pltpu.roll(s, shift=i * c, axis=0)
            s2_tot = s2_tot + pltpu.roll(s2, shift=i * c, axis=0)
        mean = s_tot / count
        var = jnp.maximum(s2_tot / count - mean * mean, 0.0)   # clamp cancellation
        scale = lax.rsqrt(var + BN_EPS) * gamma
        shift = beta - mean * scale
        return y * scale + shift

    # ---- spa1: Conv3x3(+bias) -> LeakyReLU -> BatchNorm2d ----
    y = batchnorm(_leaky(conv3x3(xs, wblk_ref[0])), g1, be1)

    # ---- spa2: Conv3x3(+bias) -> LeakyReLU ; then bn2 ----
    # (mask re-zeroes the pad ring / tail so conv2 sees proper zero padding)
    y = batchnorm(_leaky(conv3x3(y * mask, wblk_ref[1])), g2, be2)

    # ---- residual add (resident input slab) + LeakyReLU; full-width unmasked store
    o_ref[...] = _leaky(y + xs)


def init_params(key, in_channels, out_channels):
    # Deterministic synthetic parameters (shapes match the PyTorch module).
    # The residual add in forward() requires out_channels == in_channels.
    assert in_channels == out_channels, "ResSPA residual add needs Cin == Cout"
    ks = jax.random.split(key, 4)
    w1 = jax.random.normal(ks[0], (3, 3, in_channels, in_channels), jnp.float32) * 0.1
    b1 = jax.random.normal(ks[1], (in_channels,), jnp.float32) * 0.05
    w2 = jax.random.normal(ks[2], (3, 3, in_channels, out_channels), jnp.float32) * 0.1
    b2 = jax.random.normal(ks[3], (out_channels,), jnp.float32) * 0.05
    # Fresh nn.BatchNorm2d: weight=1, bias=0; running stats unused in train mode.
    g1 = jnp.ones((in_channels,), jnp.float32)
    be1 = jnp.zeros((in_channels,), jnp.float32)
    g2 = jnp.ones((out_channels,), jnp.float32)
    be2 = jnp.zeros((out_channels,), jnp.float32)
    return dict(w1=w1, b1=b1, g1=g1, be1=be1, w2=w2, b2=b2, g2=g2, be2=be2)


def pack_params(p, n, h, w):
    """One-time packing of module params into the kernel's operand layout."""
    kh, kw, cin, cout = p['w1'].shape
    hp, wp, lp, lpa = _geometry(h, w)

    def block_weights(w_hwio, bias):
        # (3,3,Cin,Cout)+(Cout,) -> block-diagonal im2col matrix with trailing bias
        # column:  rows = n*Cout + co ; cols = t*(N*Cin) + n*Cin + ci ; last col = b[co]
        wt = w_hwio.reshape(kh * kw, cin, cout).astype(jnp.float32)   # [t, ci, co]
        eye = jnp.eye(n, dtype=jnp.float32)                           # [n_out, n_in]
        blk = jnp.einsum('nm,tio->notmi', eye, wt).reshape(n * cout, kh * kw * n * cin)
        bias_col = jnp.tile(bias.astype(jnp.float32), n).reshape(n * cout, 1)
        return jnp.concatenate([blk, bias_col], axis=1)               # (NC, 9*NC+1)

    wblk = jnp.stack([block_weights(p['w1'], p['b1']),
                      block_weights(p['w2'], p['b2'])]).astype(jnp.bfloat16)

    def rows(v):       # (C,) -> (N*C,) replicated across the batch rows
        return jnp.tile(v.astype(jnp.float32), n)

    bnp = jnp.stack([rows(p['g1']), rows(p['be1']),
                     rows(p['g2']), rows(p['be2'])], axis=1)          # (NC, 4)

    m2 = np.zeros((hp, wp), np.float32)
    m2[1:-1, 1:-1] = 1.0
    mask = np.zeros((1, lpa), np.float32)
    mask[0, :lp] = m2.reshape(-1)

    return dict(wblk=wblk, bnp=bnp, mask=jnp.asarray(mask))


@jax.jit
def res_spa_forward(x_nchw, kp):
    # Layout plumbing only: NCHW -> lane-dense (N*C, LPA) padded slab is a pure
    # pad + reshape (no transposes); the inverse on the way out is slice + reshape.
    x = x_nchw.astype(jnp.float32)
    n, c, h, w = x.shape
    hp, wp, lp, lpa = _geometry(h, w)
    nc = n * c

    xs = jnp.pad(jnp.pad(x, ((0, 0), (0, 0), (1, 1), (1, 1))).reshape(nc, lp),
                 ((0, 0), (0, lpa - lp)))                             # (NC, LPA)

    kernel = functools.partial(_res_spa_kernel, n=n, c=c, h=h, w=w)
    out_flat = pl.pallas_call(
        kernel,
        out_shape=jax.ShapeDtypeStruct((nc, lpa), jnp.float32),
        in_specs=[pl.BlockSpec(memory_space=pltpu.MemorySpace.VMEM)] * 4,
        out_specs=pl.BlockSpec(memory_space=pltpu.MemorySpace.VMEM),
    )(xs, kp['mask'], kp['wblk'], kp['bnp'])

    return out_flat[:, :lp].reshape(n, c, hp, wp)[:, :, 1:-1, 1:-1]   # back to NCHW


def ref_forward(x_nchw, p):
    # Pure-JAX f32 reference (same semantics) for a correctness sanity check.
    x = jnp.transpose(x_nchw, (0, 2, 3, 1)).astype(jnp.float32)

    def conv(z, w, b):
        return lax.conv_general_dilated(
            z, w, (1, 1), 'SAME',
            dimension_numbers=('NHWC', 'HWIO', 'NHWC')) + b.reshape(1, 1, 1, -1)

    def bn(z, g, be):
        m = jnp.mean(z, axis=(0, 1, 2), keepdims=True)
        v = jnp.mean((z - m) ** 2, axis=(0, 1, 2), keepdims=True)
        return (z - m) * lax.rsqrt(v + BN_EPS) * g.reshape(1, 1, 1, -1) \
            + be.reshape(1, 1, 1, -1)

    y = bn(_leaky(conv(x, p['w1'], p['b1'])), p['g1'], p['be1'])
    y = bn(_leaky(conv(y, p['w2'], p['b2'])), p['g2'], p['be2'])
    out = _leaky(y + x)
    return jnp.transpose(out, (0, 3, 1, 2))


if __name__ == "__main__":
    key = jax.random.PRNGKey(0)
    kx, kparam = jax.random.split(key)

    # Small shapes consistent with the module: batch=2, C_in=C_out=4, 16x16 (NCHW).
    x = jax.random.normal(kx, (2, 4, 16, 16), jnp.float32)
    raw = init_params(kparam, in_channels=4, out_channels=4)
    packed = pack_params(raw, n=2, h=16, w=16)

    out = jax.block_until_ready(res_spa_forward(x, packed))
    ref = jax.block_until_ready(ref_forward(x, raw))
    np.testing.assert_allclose(np.asarray(out), np.asarray(ref),
                               rtol=2e-2, atol=2e-2)
    print("KERNEL_OK")
</pallas_src>

<mosaic_0001>
module attributes {stable_mosaic.version = 11 : i64} {
  func.func @_res_spa_kernel(%arg0: memref<8x384xf32, #tpu.memory_space<vmem>>, %arg1: memref<1x384xf32, #tpu.memory_space<vmem>>, %arg2: memref<2x8x73xbf16, #tpu.memory_space<vmem>>, %arg3: memref<8x4xf32, #tpu.memory_space<vmem>>, %arg4: memref<8x384xf32, #tpu.memory_space<vmem>>) attributes {dimension_semantics = [], scalar_prefetch = 0 : i64, scratch_operands = 0 : i64, tpu.core_type = #tpu.core_type<tc>} {
    %c0 = arith.constant 0 : index
    %c0_0 = arith.constant 0 : index
    %0 = vector.load %arg0[%c0, %c0_0] : memref<8x384xf32, #tpu.memory_space<vmem>>, vector<8x384xf32>
    %c0_1 = arith.constant 0 : index
    %c0_2 = arith.constant 0 : index
    %1 = vector.load %arg1[%c0_1, %c0_2] : memref<1x384xf32, #tpu.memory_space<vmem>>, vector<1x384xf32>
    %c0_3 = arith.constant 0 : index
    %c0_4 = arith.constant 0 : index
    %2 = vector.load %arg3[%c0_3, %c0_4] : memref<8x4xf32, #tpu.memory_space<vmem>>, vector<8x4xf32>
    %3 = vector.extract_strided_slice %2 {offsets = [0, 0], sizes = [8, 1], strides = [1, 1]} : vector<8x4xf32> to vector<8x1xf32>
    %4 = vector.extract_strided_slice %2 {offsets = [0, 1], sizes = [8, 1], strides = [1, 1]} : vector<8x4xf32> to vector<8x1xf32>
    %5 = vector.extract_strided_slice %2 {offsets = [0, 2], sizes = [8, 1], strides = [1, 1]} : vector<8x4xf32> to vector<8x1xf32>
    %6 = vector.extract_strided_slice %2 {offsets = [0, 3], sizes = [8, 1], strides = [1, 1]} : vector<8x4xf32> to vector<8x1xf32>
    %cst = arith.constant 1.000000e+00 : f32
    %7 = vector.broadcast %cst : f32 to vector<1x384xf32>
    %c0_5 = arith.constant 0 : index
    %c0_6 = arith.constant 0 : index
    %c0_7 = arith.constant 0 : index
    %8 = vector.load %arg2[%c0_5, %c0_6, %c0_7] : memref<2x8x73xbf16, #tpu.memory_space<vmem>>, vector<1x8x73xbf16>
    %9 = vector.shape_cast %8 : vector<1x8x73xbf16> to vector<8x73xbf16>
    %c19_i32 = arith.constant 19 : i32
    %10 = tpu.dynamic_rotate %0 by %c19_i32 dim 1 : vector<8x384xf32>, i32 -> vector<8x384xf32>
    %c18_i32 = arith.constant 18 : i32
    %11 = tpu.dynamic_rotate %0 by %c18_i32 dim 1 : vector<8x384xf32>, i32 -> vector<8x384xf32>
    %c17_i32 = arith.constant 17 : i32
    %12 = tpu.dynamic_rotate %0 by %c17_i32 dim 1 : vector<8x384xf32>, i32 -> vector<8x384xf32>
    %c1_i32 = arith.constant 1 : i32
    %13 = tpu.dynamic_rotate %0 by %c1_i32 dim 1 : vector<8x384xf32>, i32 -> vector<8x384xf32>
    %c383_i32 = arith.constant 383 : i32
    %14 = tpu.dynamic_rotate %0 by %c383_i32 dim 1 : vector<8x384xf32>, i32 -> vector<8x384xf32>
    %c367_i32 = arith.constant 367 : i32
    %15 = tpu.dynamic_rotate %0 by %c367_i32 dim 1 : vector<8x384xf32>, i32 -> vector<8x384xf32>
    %c366_i32 = arith.constant 366 : i32
    %16 = tpu.dynamic_rotate %0 by %c366_i32 dim 1 : vector<8x384xf32>, i32 -> vector<8x384xf32>
    %c365_i32 = arith.constant 365 : i32
    %17 = tpu.dynamic_rotate %0 by %c365_i32 dim 1 : vector<8x384xf32>, i32 -> vector<8x384xf32>
    %18 = tpu.concatenate %10, %11, %12, %13, %0, %14, %15, %16, %17, %7 in 0 : vector<8x384xf32>, vector<8x384xf32>, vector<8x384xf32>, vector<8x384xf32>, vector<8x384xf32>, vector<8x384xf32>, vector<8x384xf32>, vector<8x384xf32>, vector<8x384xf32>, vector<1x384xf32> -> vector<73x384xf32>
    %19 = arith.truncf %18 : vector<73x384xf32> to vector<73x384xbf16>
    %cst_8 = arith.constant dense<0.000000e+00> : vector<8x384xf32>
    %20 = tpu.matmul %9, %19, %cst_8 {dimension_numbers = #tpu.dot_dimension_numbers<[1], [0], [0], [1], [0, 0, 1, 1], [], []>} : vector<8x73xbf16>, vector<73x384xbf16>, vector<8x384xf32> -> vector<8x384xf32>
    %cst_9 = arith.constant 0.000000e+00 : f32
    %21 = vector.broadcast %cst_9 : f32 to vector<8x384xf32>
    %22 = arith.cmpf oge, %20, %21 : vector<8x384xf32>
    %cst_10 = arith.constant 0.00999999977 : f32
    %23 = vector.broadcast %cst_10 : f32 to vector<8x384xf32>
    %24 = arith.mulf %23, %20 : vector<8x384xf32>
    %25 = arith.select %22, %20, %24 : vector<8x384xi1>, vector<8x384xf32>
    %26 = vector.broadcast %1 : vector<1x384xf32> to vector<8x384xf32>
    %27 = arith.mulf %25, %26 : vector<8x384xf32>
    %cst_11 = arith.constant dense<0.000000e+00> : vector<8xf32>
    %28 = vector.multi_reduction <add>, %27, %cst_11 [1] : vector<8x384xf32> to vector<8xf32>
    %29 = vector.shape_cast %28 : vector<8xf32> to vector<8x1xf32>
    %30 = arith.mulf %27, %25 : vector<8x384xf32>
    %cst_12 = arith.constant dense<0.000000e+00> : vector<8xf32>
    %31 = vector.multi_reduction <add>, %30, %cst_12 [1] : vector<8x384xf32> to vector<8xf32>
    %32 = vector.shape_cast %31 : vector<8xf32> to vector<8x1xf32>
    %c4_i32 = arith.constant 4 : i32
    %33 = tpu.dynamic_rotate %29 by %c4_i32 dim 0 : vector<8x1xf32>, i32 -> vector<8x1xf32>
    %34 = arith.addf %29, %33 : vector<8x1xf32>
    %c4_i32_13 = arith.constant 4 : i32
    %35 = tpu.dynamic_rotate %32 by %c4_i32_13 dim 0 : vector<8x1xf32>, i32 -> vector<8x1xf32>
    %36 = arith.addf %32, %35 : vector<8x1xf32>
    %cst_14 = arith.constant 5.120000e+02 : f32
    %37 = vector.broadcast %cst_14 : f32 to vector<8x1xf32>
    %38 = arith.divf %34, %37 : vector<8x1xf32>
    %cst_15 = arith.constant 5.120000e+02 : f32
    %39 = vector.broadcast %cst_15 : f32 to vector<8x1xf32>
    %40 = arith.divf %36, %39 : vector<8x1xf32>
    %41 = arith.mulf %38, %38 : vector<8x1xf32>
    %42 = arith.subf %40, %41 : vector<8x1xf32>
    %cst_16 = arith.constant 0.000000e+00 : f32
    %43 = vector.broadcast %cst_16 : f32 to vector<8x1xf32>
    %44 = arith.maximumf %42, %43 : vector<8x1xf32>
    %cst_17 = arith.constant 9.99999974E-6 : f32
    %45 = vector.broadcast %cst_17 : f32 to vector<8x1xf32>
    %46 = arith.addf %44, %45 : vector<8x1xf32>
    %47 = math.rsqrt %46 : vector<8x1xf32>
    %48 = arith.mulf %47, %3 : vector<8x1xf32>
    %49 = arith.mulf %38, %48 : vector<8x1xf32>
    %50 = arith.subf %4, %49 : vector<8x1xf32>
    %51 = vector.broadcast %48 : vector<8x1xf32> to vector<8x384xf32>
    %52 = arith.mulf %25, %51 : vector<8x384xf32>
    %53 = vector.broadcast %50 : vector<8x1xf32> to vector<8x384xf32>
    %54 = arith.addf %52, %53 : vector<8x384xf32>
    %55 = vector.broadcast %1 : vector<1x384xf32> to vector<8x384xf32>
    %56 = arith.mulf %54, %55 : vector<8x384xf32>
    %c1 = arith.constant 1 : index
    %c0_18 = arith.constant 0 : index
    %c0_19 = arith.constant 0 : index
    %57 = vector.load %arg2[%c1, %c0_18, %c0_19] : memref<2x8x73xbf16, #tpu.memory_space<vmem>>, vector<1x8x73xbf16>
    %58 = vector.shape_cast %57 : vector<1x8x73xbf16> to vector<8x73xbf16>
    %c19_i32_20 = arith.constant 19 : i32
    %59 = tpu.dynamic_rotate %56 by %c19_i32_20 dim 1 : vector<8x384xf32>, i32 -> vector<8x384xf32>
    %c18_i32_21 = arith.constant 18 : i32
    %60 = tpu.dynamic_rotate %56 by %c18_i32_21 dim 1 : vector<8x384xf32>, i32 -> vector<8x384xf32>
    %c17_i32_22 = arith.constant 17 : i32
    %61 = tpu.dynamic_rotate %56 by %c17_i32_22 dim 1 : vector<8x384xf32>, i32 -> vector<8x384xf32>
    %c1_i32_23 = arith.constant 1 : i32
    %62 = tpu.dynamic_rotate %56 by %c1_i32_23 dim 1 : vector<8x384xf32>, i32 -> vector<8x384xf32>
    %c383_i32_24 = arith.constant 383 : i32
    %63 = tpu.dynamic_rotate %56 by %c383_i32_24 dim 1 : vector<8x384xf32>, i32 -> vector<8x384xf32>
    %c367_i32_25 = arith.constant 367 : i32
    %64 = tpu.dynamic_rotate %56 by %c367_i32_25 dim 1 : vector<8x384xf32>, i32 -> vector<8x384xf32>
    %c366_i32_26 = arith.constant 366 : i32
    %65 = tpu.dynamic_rotate %56 by %c366_i32_26 dim 1 : vector<8x384xf32>, i32 -> vector<8x384xf32>
    %c365_i32_27 = arith.constant 365 : i32
    %66 = tpu.dynamic_rotate %56 by %c365_i32_27 dim 1 : vector<8x384xf32>, i32 -> vector<8x384xf32>
    %67 = tpu.concatenate %59, %60, %61, %62, %56, %63, %64, %65, %66, %7 in 0 : vector<8x384xf32>, vector<8x384xf32>, vector<8x384xf32>, vector<8x384xf32>, vector<8x384xf32>, vector<8x384xf32>, vector<8x384xf32>, vector<8x384xf32>, vector<8x384xf32>, vector<1x384xf32> -> vector<73x384xf32>
    %68 = arith.truncf %67 : vector<73x384xf32> to vector<73x384xbf16>
    %cst_28 = arith.constant dense<0.000000e+00> : vector<8x384xf32>
    %69 = tpu.matmul %58, %68, %cst_28 {dimension_numbers = #tpu.dot_dimension_numbers<[1], [0], [0], [1], [0, 0, 1, 1], [], []>} : vector<8x73xbf16>, vector<73x384xbf16>, vector<8x384xf32> -> vector<8x384xf32>
    %cst_29 = arith.constant 0.000000e+00 : f32
    %70 = vector.broadcast %cst_29 : f32 to vector<8x384xf32>
    %71 = arith.cmpf oge, %69, %70 : vector<8x384xf32>
    %cst_30 = arith.constant 0.00999999977 : f32
    %72 = vector.broadcast %cst_30 : f32 to vector<8x384xf32>
    %73 = arith.mulf %72, %69 : vector<8x384xf32>
    %74 = arith.select %71, %69, %73 : vector<8x384xi1>, vector<8x384xf32>
    %75 = vector.broadcast %1 : vector<1x384xf32> to vector<8x384xf32>
    %76 = arith.mulf %74, %75 : vector<8x384xf32>
    %cst_31 = arith.constant dense<0.000000e+00> : vector<8xf32>
    %77 = vector.multi_reduction <add>, %76, %cst_31 [1] : vector<8x384xf32> to vector<8xf32>
    %78 = vector.shape_cast %77 : vector<8xf32> to vector<8x1xf32>
    %79 = arith.mulf %76, %74 : vector<8x384xf32>
    %cst_32 = arith.constant dense<0.000000e+00> : vector<8xf32>
    %80 = vector.multi_reduction <add>, %79, %cst_32 [1] : vector<8x384xf32> to vector<8xf32>
    %81 = vector.shape_cast %80 : vector<8xf32> to vector<8x1xf32>
    %c4_i32_33 = arith.constant 4 : i32
    %82 = tpu.dynamic_rotate %78 by %c4_i32_33 dim 0 : vector<8x1xf32>, i32 -> vector<8x1xf32>
    %83 = arith.addf %78, %82 : vector<8x1xf32>
    %c4_i32_34 = arith.constant 4 : i32
    %84 = tpu.dynamic_rotate %81 by %c4_i32_34 dim 0 : vector<8x1xf32>, i32 -> vector<8x1xf32>
    %85 = arith.addf %81, %84 : vector<8x1xf32>
    %cst_35 = arith.constant 5.120000e+02 : f32
    %86 = vector.broadcast %cst_35 : f32 to vector<8x1xf32>
    %87 = arith.divf %83, %86 : vector<8x1xf32>
    %cst_36 = arith.constant 5.120000e+02 : f32
    %88 = vector.broadcast %cst_36 : f32 to vector<8x1xf32>
    %89 = arith.divf %85, %88 : vector<8x1xf32>
    %90 = arith.mulf %87, %87 : vector<8x1xf32>
    %91 = arith.subf %89, %90 : vector<8x1xf32>
    %cst_37 = arith.constant 0.000000e+00 : f32
    %92 = vector.broadcast %cst_37 : f32 to vector<8x1xf32>
    %93 = arith.maximumf %91, %92 : vector<8x1xf32>
    %cst_38 = arith.constant 9.99999974E-6 : f32
    %94 = vector.broadcast %cst_38 : f32 to vector<8x1xf32>
    %95 = arith.addf %93, %94 : vector<8x1xf32>
    %96 = math.rsqrt %95 : vector<8x1xf32>
    %97 = arith.mulf %96, %5 : vector<8x1xf32>
    %98 = arith.mulf %87, %97 : vector<8x1xf32>
    %99 = arith.subf %6, %98 : vector<8x1xf32>
    %100 = vector.broadcast %97 : vector<8x1xf32> to vector<8x384xf32>
    %101 = arith.mulf %74, %100 : vector<8x384xf32>
    %102 = vector.broadcast %99 : vector<8x1xf32> to vector<8x384xf32>
    %103 = arith.addf %101, %102 : vector<8x384xf32>
    %104 = arith.addf %103, %0 : vector<8x384xf32>
    %cst_39 = arith.constant 0.000000e+00 : f32
    %105 = vector.broadcast %cst_39 : f32 to vector<8x384xf32>
    %106 = arith.cmpf oge, %104, %105 : vector<8x384xf32>
    %cst_40 = arith.constant 0.00999999977 : f32
    %107 = vector.broadcast %cst_40 : f32 to vector<8x384xf32>
    %108 = arith.mulf %107, %104 : vector<8x384xf32>
    %109 = arith.select %106, %104, %108 : vector<8x384xi1>, vector<8x384xf32>
    %c0_41 = arith.constant 0 : index
    %c0_42 = arith.constant 0 : index
    %110 = vector.load %arg4[%c0_41, %c0_42] : memref<8x384xf32, #tpu.memory_space<vmem>>, vector<8x384xf32>
    tpu.vector_store %arg4[%c0_41, %c0_42], %109 {strides = array<i32>} : memref<8x384xf32, #tpu.memory_space<vmem>>, vector<8x384xf32>,
    return
  }
}

</mosaic_0001>

<bundles_post_ra>
// kernel: res_spa_forward.1
= control target key start
LH: loop header
LB: loop body
LE: loop exit
PB: predicated region body
PF: predicated region fallthrough
CT: control target
= control target key end

     0   :  { %v709_v3 = vmov 0.0   ;;  %s710_s21 = smov 19   ;;  %s711_s22 = smov 18   ;;  %vm717_vm0 = vmmov 0   ;;  %v718_v6 = vmov 0   ;;  %v30_v7 = vlaneseq  ;;  %s1024_s0 = inlined_call_operand.vmem [shape: f32[8,384], index: 0, kind: input, shape index: {}]   ;;  %s1025_s2 = inlined_call_operand.vmem [shape: bf16[2,8,73], index: 2, kind: input, shape index: {}]   ;;  %s1026_s1 = inlined_call_operand.vmem [shape: f32[1,384], index: 1, kind: input, shape index: {}]   ;;  %s1027_s3 = inlined_call_operand.vmem [shape: f32[8,4], index: 3, kind: input, shape index: {}]   ;;  %s1028_s4 = inlined_call_operand.vmem [shape: f32[8,384], index: 4, kind: output, shape index: {}]  }
   0x1   :  { %v754_v0 = vld [vmem:[%s1024_s0 + $0x10] sm:$0xff]  ;;  %v759_v1 = vld [vmem:[%s1024_s0] sm:$0xff]  ;;  %v764_v2 = vld [vmem:[%s1024_s0 + $0x8] sm:$0xff]  ;;  %575 = vmatprep.subr.bf16.mxu1 %v709_v3  ;;  %s712_s0 = smov 1   ;;  %s713_s23 = smov 17   ;;  %585 = vmatprep.mubr.msk.bf16.mxu1 %vm717_vm0, %v709_v3  ;;  %vm125_vm8 = vcmask 1043456  }
   0x2   :  { %28 = vrot.lane.b32.xlu1 %v754_v0, %s710_s21  ;;  %v620_v4 = vpack.i.bf16 %v764_v2, %v759_v1  ;;  %v640_v5 = vpack.i.bf16 %v754_v0, %v764_v2  ;;  %s714_s24 = smov 127   ;;  %s715_s25 = smov 110   ;;  %170 = vmatprep.mubr.bf16.mxu0 %v718_v6  ;;  %v800_v9 = vand.u32 127, %v30_v7  ;;  %vm126_vm10 = vcmask 1044480  }
   0x3   :  { %s716_s26 = smov 111   ;;  %660 = vset.pattern.permute.xlu1 %v718_v6  ;;  %s719_s27 = smov 109   ;;  %vm121_vm11 = vcmask 596992  }
   0x4   :  { %621 = vrot.lane.b32.xlu0 %v620_v4, %s710_s21  ;;  %vm32_vm1 = vcmp.lt.s32.totalorder %v800_v9, 19  ;;  %vm42_vm2 = vcmp.lt.s32.totalorder %v800_v9, 18  ;;  %vm62_vm3 = vcmp.lt.s32.totalorder %v800_v9, 1  ;;  %vm52_vm4 = vcmp.lt.s32.totalorder %v800_v9, 17  ;;  %s725_s8 = smov 3  }
   0x5   :  { %vm72_vm5 = vcmp.lt.s32.totalorder %v800_v9, 127  ;;  %vm92_vm6 = vcmp.lt.s32.totalorder %v800_v9, 110  ;;  %vm82_vm7 = vcmp.lt.s32.totalorder %v800_v9, 111  ;;  %vm102_vm9 = vcmp.lt.s32.totalorder %v800_v9, 109 }
   0x6   :  { %40 = vrot.lane.b32.xlu1 %v754_v0, %s711_s22 }
   0x8   :  { %626 = vrot.lane.b32.xlu0 %v620_v4, %s711_s22 }
   0xa   :  { %636 = vrot.lane.b32.xlu1 %v620_v4, %s712_s0 }
   0xc   :  { %631 = vrot.lane.b32.xlu0 %v620_v4, %s713_s23 }
   0xe   :  { %60 = vrot.lane.b32.xlu1 %v754_v0, %s712_s0 }
  0x10   :  { %50 = vrot.lane.b32.xlu0 %v754_v0, %s713_s23 }
  0x12   :  { %66 = vrot.lane.b32.xlu1 %v759_v1, %s714_s24 }
  0x14   :  { %641 = vrot.lane.b32.xlu0 %v640_v5, %s714_s24 }
  0x16   :  { %651 = vrot.lane.b32.xlu1 %v640_v5, %s715_s25 }
  0x18   :  { %646 = vrot.lane.b32.xlu0 %v640_v5, %s716_s26 }
  0x1a   :  { %86 = vrot.lane.b32.xlu1 %v759_v1, %s715_s25 }
  0x1c   :  { %76 = vrot.lane.b32.xlu0 %v759_v1, %s716_s26 }
  0x1e   :  { %96 = vrot.lane.b32.xlu1 %v759_v1, %s719_s27 }
  0x20   :  { %656 = vrot.lane.b32.xlu0 %v640_v5, %s719_s27 }
  0x74   :  { %v29_v8 = vpop.permute.xlu1 %28 }
  0x76   :  { %v622_v10 = vpop.permute.xlu0 %621 }
  0x77   :  { %v624_v11 = vunpack.i.h.bf16 %v622_v10  ;;  %v623_v12 = vunpack.i.l.bf16 %v622_v10 }
  0x78   :  { %v41_v13 = vpop.permute.xlu1 %40 }
  0x79   :  { %v34_v18 = vsel %vm32_vm1, %v623_v12, %v624_v11  ;;  %v33_v19 = vsel %vm32_vm1, %v624_v11, %v29_v8  ;;  %v35_v27 = vsel %vm32_vm1, %v29_v8, %v623_v12 }
  0x7a   :  { %v627_v14 = vpop.permute.xlu0 %626 }
  0x7b   :  { %v629_v15 = vunpack.i.h.bf16 %v627_v14  ;;  %v628_v16 = vunpack.i.l.bf16 %v627_v14 }
  0x7c   :  { %v637_v17 = vpop.permute.xlu1 %636 }
  0x7d   :  { %v639_v20 = vunpack.i.h.bf16 %v637_v17  ;;  %v638_v21 = vunpack.i.l.bf16 %v637_v17  ;;  %v44_v22 = vsel %vm42_vm2, %v628_v16, %v629_v15  ;;  %v43_v23 = vsel %vm42_vm2, %v629_v15, %v41_v13 }
  0x7e   :  { %v632_v24 = vpop.permute.xlu0 %631  ;;  %v107_v25 = vpack.c.bf16 %v44_v22, %v34_v18  ;;  %v108_v26 = vpack.c.bf16 %v43_v23, %v33_v19  ;;  %v45_v28 = vsel %vm42_vm2, %v41_v13, %v628_v16  ;;  %v720_v15 = vmov 65535  }
  0x7f   :  { %v634_v29 = vunpack.i.h.bf16 %v632_v24  ;;  %v633_v30 = vunpack.i.l.bf16 %v632_v24  ;;  %v106_v31 = vpack.c.bf16 %v45_v28, %v35_v27  ;;  %v64_v32 = vsel %vm62_vm3, %v638_v21, %v639_v20 }
  0x80   :  { %138 = vmatprep.subr.bf16.mxu0 %v107_v25  ;;  %576 = vmatpush3.bf16.msra.mxu1 %v108_v26  ;;  %v61_v33 = vpop.permute.xlu1 %60  ;;  %v127_v16 = vsel %vm125_vm8, 4294967295, %v720_v15  ;;  %v721_v23 = vmov 1.0  }
  0x81   :  { %139 = vmatpush1.bf16.msra.mxu0 %v106_v31  ;;  %v63_v34 = vsel %vm62_vm3, %v639_v20, %v61_v33  ;;  %v65_v35 = vsel %vm62_vm3, %v61_v33, %v638_v21  ;;  %v54_v36 = vsel %vm52_vm4, %v633_v30, %v634_v29  ;;  %577 = vmatprep.subr.bf16.mxu1 %v709_v3  ;;  %v865_v22 = vsel %vm126_vm10, %v127_v16, 0  ;;  %v21_v33 = vld [vmem:[%s1026_s1] sm:$0x7] }
  0x82   :  { %v51_v37 = vpop.permute.xlu0 %50  ;;  %v110_v38 = vpack.c.bf16 %v64_v32, %v54_v36  ;;  %v230_v31 = vshrl.u32 %v30_v7, 7 }
  0x83   :  { %v53_v39 = vsel %vm52_vm4, %v634_v29, %v51_v37  ;;  %v55_v40 = vsel %vm52_vm4, %v51_v37, %v633_v30  ;;  %v23_v30 = vld [vmem:[%s1025_s2] sm:$0xf] }
  0x84   :  { %v109_v41 = vpack.c.bf16 %v65_v35, %v55_v40  ;;  %v111_v42 = vpack.c.bf16 %v63_v34, %v53_v39  ;;  %140 = vmatprep.subr.bf16.mxu0 %v110_v38  ;;  %v67_v43 = vpop.permute.xlu1 %66  ;;  %v231_v32 = vsub.s32 0, %v230_v31  ;;  %v235_v34 = vsub.s32 1, %v230_v31 }
  0x85   :  { %v239_v35 = vsub.s32 2, %v230_v31 }
  0x86   :  { %v642_v44 = vpop.permute.xlu0 %641  ;;  %141 = vmatpush1.bf16.msra.mxu0 %v109_v41  ;;  %578 = vmatpush3.bf16.msra.mxu1 %v111_v42  ;;  %v886_v40 = vrot.slane %v21_v33, %v231_v32 }
  0x87   :  { %v644_v45 = vunpack.i.h.bf16 %v642_v44  ;;  %v643_v46 = vunpack.i.l.bf16 %v642_v44  ;;  %579 = vmatprep.subr.bf16.mxu1 %v709_v3  ;;  %v888_v44 = vrot.slane %v21_v33, %v235_v34  ;;  %v890_v7 = vrot.slane %v21_v33, %v239_v35 }
  0x88   :  { %v652_v47 = vpop.permute.xlu1 %651 }
  0x89   :  { %v654_v48 = vunpack.i.h.bf16 %v652_v47  ;;  %v653_v49 = vunpack.i.l.bf16 %v652_v47  ;;  %v73_v50 = vsel %vm72_vm5, %v643_v46, %v644_v45  ;;  %v75_v51 = vsel %vm72_vm5, %v644_v45, %v67_v43 }
  0x8a   :  { %v647_v52 = vpop.permute.xlu0 %646  ;;  %v113_v53 = vpack.c.bf16 %v73_v50, %v764_v2  ;;  %v114_v54 = vpack.c.bf16 %v75_v51, %v754_v0  ;;  %v74_v55 = vsel %vm72_vm5, %v67_v43, %v643_v46 }
  0x8b   :  { %v649_v56 = vunpack.i.h.bf16 %v647_v52  ;;  %v648_v57 = vunpack.i.l.bf16 %v647_v52  ;;  %v112_v58 = vpack.c.bf16 %v74_v55, %v759_v1  ;;  %v93_v59 = vsel %vm92_vm6, %v653_v49, %v654_v48 }
  0x8c   :  { %142 = vmatprep.subr.bf16.mxu0 %v113_v53  ;;  %580 = vmatpush3.bf16.msra.mxu1 %v114_v54  ;;  %v87_v60 = vpop.permute.xlu1 %86 }
  0x8d   :  { %143 = vmatpush1.bf16.msra.mxu0 %v112_v58  ;;  %v94_v61 = vsel %vm92_vm6, %v87_v60, %v653_v49  ;;  %v95_v62 = vsel %vm92_vm6, %v654_v48, %v87_v60  ;;  %v83_v63 = vsel %vm82_vm7, %v648_v57, %v649_v56  ;;  %581 = vmatprep.subr.bf16.mxu1 %v709_v3 }
  0x8e   :  { %v77_v4 = vpop.permute.xlu0 %76  ;;  %v116_v5 = vpack.c.bf16 %v93_v59, %v83_v63 }
  0x8f   :  { %v84_v8 = vsel %vm82_vm7, %v77_v4, %v648_v57  ;;  %v85_v10 = vsel %vm82_vm7, %v649_v56, %v77_v4 }
  0x90   :  { %v115_v11 = vpack.c.bf16 %v94_v61, %v84_v8  ;;  %v117_v12 = vpack.c.bf16 %v95_v62, %v85_v10  ;;  %144 = vmatprep.subr.bf16.mxu0 %v116_v5  ;;  %v97_v14 = vpop.permute.xlu1 %96 }
  0x92   :  { %v657_v13 = vpop.permute.xlu0 %656  ;;  %145 = vmatpush1.bf16.msra.mxu0 %v115_v11  ;;  %582 = vmatpush3.bf16.msra.mxu1 %v117_v12 }
  0x93   :  { %v659_v17 = vunpack.i.h.bf16 %v657_v13  ;;  %v658_v18 = vunpack.i.l.bf16 %v657_v13  ;;  %583 = vmatprep.subr.bf16.mxu1 %v709_v3 }
  0x95   :  { %v103_v19 = vsel %vm102_vm9, %v658_v18, %v659_v17  ;;  %v104_v20 = vsel %vm102_vm9, %v97_v14, %v658_v18  ;;  %v105_v21 = vsel %vm102_vm9, %v659_v17, %v97_v14  ;;  %v722_v17 = vmov 1   ;;  %v898_v18 = vld [vmem:[%s1027_s3] sm:$0xff] }
  0x96   :  { %v118_v24 = vpack.c.bf16 %v721_v23, %v104_v20  ;;  %v120_v25 = vpack.c.bf16 %v721_v23, %v105_v21  ;;  %v119_v26 = vpack.c.bf16 %v721_v23, %v103_v19  ;;  %661 = vset.pattern.permute.xlu0 %v722_v17 }
  0x98   :  { %v133_v27 = vand.u32 %v865_v22, %v119_v26  ;;  %v136_v28 = vand.u32 %v865_v22, %v120_v25  ;;  %v130_v29 = vand.u32 %v865_v22, %v118_v24 }
  0x9a   :  { %146 = vmatprep.subr.bf16.mxu0 %v133_v27  ;;  %584 = vmatpush3.bf16.msra.mxu1 %v136_v28 }
  0x9b   :  { %147 = vmatpush1.bf16.msra.mxu0 %v130_v29  ;;  %589 = vmatprep.subr.bf16.mxu1 %v709_v3 }
  0x9d   :  { %586 = vmatmul.mubr.msk.bf16.vlgmr.msra.gmra.mrb[0].mxu1 %vm121_vm11, %v23_v30 }
  0x9e   :  { %558 = vmatmul.mubr.msk.bf16.vlgmr.msra.gmra.mrb[0].mxu0 %vm121_vm11, %v23_v30  ;;  %599 = vmatprep.mubr.msk.bf16.mxu1 %vm717_vm0, %v709_v3 }
  0x9f   :  { %429 = vmatprep.mubr.bf16.mxu0 %v718_v6 }
 0x170   :  { %v213_v36 = vpop.f32.mrb[0].mxu1 }
 0x171   :  { %vm221_vm12 = vcmp.ge.f32.partialorder %v213_v36, 0.0  ;;  %v224_v37 = vmul.f32 0.01, %v213_v36  ;;  %v172_v38 = vpop.f32.mrb[0].mxu0  ;;  %v587_v39 = vpop.f32.mrb[1].mxu1 }
 0x172   :  { %vm219_vm13 = vcmp.ge.f32.partialorder %v172_v38, 0.0  ;;  %v222_v41 = vmul.f32 0.01, %v172_v38  ;;  %v174_v42 = vpop.f32.mrb[1].mxu0  ;;  %v216_v43 = vpop.f32.mrb[2].mxu1 }
 0x173   :  { %v227_v45 = vsel %vm221_vm12, %v213_v36, %v224_v37  ;;  %vm220_vm14 = vcmp.ge.f32.partialorder %v174_v42, 0.0  ;;  %v223_v46 = vmul.f32 0.01, %v174_v42  ;;  %v176_v47 = vpop.f32.mrb[2].mxu0  ;;  %v588_v48 = vpop.f32.mrb[3].mxu1 }
 0x174   :  { %v225_v49 = vsel %vm219_vm13, %v172_v38, %v222_v41  ;;  %v177_v50 = vpop.f32.mrb[3].mxu0  ;;  %v246_v54 = vmul.f32 %v890_v7, %v227_v45 }
 0x175   :  { %v226_v51 = vsel %vm220_vm14, %v174_v42, %v223_v46  ;;  %v244_v52 = vmul.f32 %v886_v40, %v225_v49 }
 0x176   :  { %v245_v53 = vmul.f32 %v888_v44, %v226_v51  ;;  %v253_v59 = vmul.f32 %v246_v54, %v227_v45 }
 0x177   :  { %v251_v55 = vmul.f32 %v244_v52, %v225_v49 }
 0x178   :  { %v247_v56 = vadd.f32 %v245_v53, %v244_v52  ;;  %v252_v57 = vmul.f32 %v245_v53, %v226_v51 }
 0x17a   :  { %v248_v58 = vadd.f32 %v247_v56, %v246_v54  ;;  %v254_v60 = vadd.f32 %v252_v57, %v251_v55 }
 0x17c   :  { %249 = vadd.xlane.f32.xlu0 %v248_v58  ;;  %v255_v61 = vadd.f32 %v254_v60, %v253_v59 }
 0x17e   :  { %256 = vadd.xlane.f32.xlu1 %v255_v61 }
 0x209   :  { %v250_v62 = vpop.xlane.xlu0 %249 }
 0x20a   :  { %v258_v63 = vrot.slane %v250_v62, 4 }
 0x20b   :  { %v257_v4 = vpop.xlane.xlu1 %256 }
 0x20c   :  { %v259_v5 = vadd.f32 %v258_v63, %v250_v62  ;;  %v260_v8 = vrot.slane %v257_v4, 4 }
 0x20e   :  { %v263_v10 = vmul.f32 0.001953125, %v259_v5  ;;  %v261_v11 = vadd.f32 %v260_v8, %v257_v4 }
 0x210   :  { %v265_v12 = vmul.f32 %v263_v10, %v263_v10  ;;  %v264_v13 = vmul.f32 0.001953125, %v261_v11 }
 0x212   :  { %v266_v14 = vsub.f32 %v264_v13, %v265_v12 }
 0x214   :  { %v267_v15 = vmax.f32 %v266_v14, 0.0 }
 0x216   :  { %v268_v16 = vadd.f32 1e-05, %v267_v15 }
 0x218   :  { %705 = vrsqrt.f32 %v268_v16 }
 0x222   :  { %v706_v19 = vpop.eup %705 }
 0x223   :  { %v270_v20 = vmul.f32 %v706_v19, %v898_v18 }
 0x225   :  { %279 = vperm.xlu1 %660, %v270_v20   ;;  %v271_v21 = vmul.f32 %v270_v20, %v263_v10 }
 0x227   :  { %273 = vrot.lane.b32.xlu0 %v271_v21, %s712_s0 }
 0x299   :  { %v274_v24 = vpop.permute.xlu0 %273 }
 0x29a   :  { %v276_v25 = vsub.f32 %v898_v18, %v274_v24 }
 0x29c   :  { %287 = vperm.xlu0 %661, %v276_v25  }
 0x2a0   :  { %702 = vset.pattern.permute.xlu0 %v718_v6 }
 0x2a4   :  { %v280_v26 = vpop.permute.xlu1 %279 }
 0x2a5   :  { %v282_v27 = vmul.f32 %v280_v26, %v225_v49  ;;  %v283_v28 = vmul.f32 %v280_v26, %v226_v51  ;;  %v284_v29 = vmul.f32 %v280_v26, %v227_v45 }
 0x31b   :  { %v288_v30 = vpop.permute.xlu0 %287 }
 0x31c   :  { %v290_v31 = vadd.f32 %v288_v30, %v282_v27  ;;  %v291_v32 = vadd.f32 %v288_v30, %v283_v28  ;;  %v292_v33 = vadd.f32 %v288_v30, %v284_v29 }
 0x31e   :  { %v905_v34 = vmul.f32 %v290_v31, %v886_v40  ;;  %v908_v35 = vmul.f32 %v291_v32, %v888_v44  ;;  %v911_v36 = vmul.f32 %v292_v33, %v890_v7 }
 0x320   :  { %302 = vrot.lane.b32.xlu0 %v911_v36, %s710_s21  ;;  %v662_v6 = vpack.i.bf16 %v908_v35, %v905_v34  ;;  %v682_v37 = vpack.i.bf16 %v911_v36, %v908_v35 }
 0x322   :  { %663 = vrot.lane.b32.xlu1 %v662_v6, %s710_s21 }
 0x324   :  { %673 = vrot.lane.b32.xlu0 %v662_v6, %s713_s23 }
 0x326   :  { %668 = vrot.lane.b32.xlu1 %v662_v6, %s711_s22 }
 0x328   :  { %320 = vrot.lane.b32.xlu0 %v911_v36, %s713_s23 }
 0x32a   :  { %311 = vrot.lane.b32.xlu1 %v911_v36, %s711_s22 }
 0x32c   :  { %683 = vrot.lane.b32.xlu0 %v682_v37, %s714_s24 }
 0x32e   :  { %678 = vrot.lane.b32.xlu1 %v662_v6, %s712_s0 }
 0x330   :  { %688 = vrot.lane.b32.xlu0 %v682_v37, %s716_s26 }
 0x332   :  { %329 = vrot.lane.b32.xlu1 %v911_v36, %s712_s0 }
 0x334   :  { %343 = vrot.lane.b32.xlu0 %v905_v34, %s716_s26 }
 0x336   :  { %334 = vrot.lane.b32.xlu1 %v905_v34, %s714_s24 }
 0x338   :  { %698 = vrot.lane.b32.xlu0 %v682_v37, %s719_s27 }
 0x33a   :  { %693 = vrot.lane.b32.xlu1 %v682_v37, %s715_s25 }
 0x33e   :  { %352 = vrot.lane.b32.xlu1 %v905_v34, %s715_s25 }
 0x342   :  { %361 = vrot.lane.b32.xlu1 %v905_v34, %s719_s27 }
 0x392   :  { %v303_v38 = vpop.permute.xlu0 %302 }
 0x394   :  { %v664_v39 = vpop.permute.xlu1 %663 }
 0x395   :  { %v666_v42 = vunpack.i.h.bf16 %v664_v39  ;;  %v665_v43 = vunpack.i.l.bf16 %v664_v39 }
 0x396   :  { %v674_v41 = vpop.permute.xlu0 %673 }
 0x397   :  { %v305_v49 = vsel %vm32_vm1, %v665_v43, %v666_v42  ;;  %v304_v53 = vsel %vm32_vm1, %v666_v42, %v303_v38  ;;  %v306_v54 = vsel %vm32_vm1, %v303_v38, %v665_v43  ;;  %v676_v60 = vunpack.i.h.bf16 %v674_v41 }
 0x398   :  { %v669_v45 = vpop.permute.xlu1 %668  ;;  %v675_v61 = vunpack.i.l.bf16 %v674_v41 }
 0x399   :  { %v671_v46 = vunpack.i.h.bf16 %v669_v45  ;;  %v670_v47 = vunpack.i.l.bf16 %v669_v45 }
 0x39a   :  { %v321_v48 = vpop.permute.xlu0 %320  ;;  %v323_v11 = vsel %vm52_vm4, %v675_v61, %v676_v60 }
 0x39b   :  { %v314_v50 = vsel %vm42_vm2, %v670_v47, %v671_v46  ;;  %v322_v16 = vsel %vm52_vm4, %v676_v60, %v321_v48  ;;  %v324_v17 = vsel %vm52_vm4, %v321_v48, %v675_v61  ;;  %v560_v61 = vld [vmem:[%s1025_s2 + $0x4] sm:$0xf]  ;;  %s723_s2 = smov 126  }
 0x39c   :  { %v312_v51 = vpop.permute.xlu1 %311  ;;  %v371_v52 = vpack.c.bf16 %v314_v50, %v305_v49 }
 0x39d   :  { %v313_v55 = vsel %vm42_vm2, %v671_v46, %v312_v51  ;;  %v315_v56 = vsel %vm42_vm2, %v312_v51, %v670_v47 }
 0x39e   :  { %v370_v57 = vpack.c.bf16 %v315_v56, %v306_v54  ;;  %v372_v58 = vpack.c.bf16 %v313_v55, %v304_v53  ;;  %v684_v59 = vpop.permute.xlu0 %683  ;;  %397 = vmatprep.subr.bf16.mxu0 %v371_v52 }
 0x39f   :  { %v686_v62 = vunpack.i.h.bf16 %v684_v59  ;;  %v685_v63 = vunpack.i.l.bf16 %v684_v59 }
 0x3a0   :  { %v679_v4 = vpop.permute.xlu1 %678  ;;  %398 = vmatpush1.bf16.msra.mxu0 %v370_v57  ;;  %590 = vmatpush3.bf16.msra.mxu1 %v372_v58 }
 0x3a1   :  { %v681_v5 = vunpack.i.h.bf16 %v679_v4  ;;  %v680_v8 = vunpack.i.l.bf16 %v679_v4  ;;  %591 = vmatprep.subr.bf16.mxu1 %v709_v3  ;;  %v340_v15 = vsel %vm72_vm5, %v685_v63, %v686_v62 }
 0x3a2   :  { %v689_v10 = vpop.permute.xlu0 %688  ;;  %v377_v26 = vpack.c.bf16 %v340_v15, %v908_v35 }
 0x3a3   :  { %v332_v12 = vsel %vm62_vm3, %v680_v8, %v681_v5  ;;  %v691_v33 = vunpack.i.h.bf16 %v689_v10  ;;  %v690_v6 = vunpack.i.l.bf16 %v689_v10 }
 0x3a4   :  { %v330_v13 = vpop.permute.xlu1 %329  ;;  %v374_v14 = vpack.c.bf16 %v332_v12, %v323_v11 }
 0x3a5   :  { %v331_v19 = vsel %vm62_vm3, %v681_v5, %v330_v13  ;;  %v333_v20 = vsel %vm62_vm3, %v330_v13, %v680_v8 }
 0x3a6   :  { %v373_v21 = vpack.c.bf16 %v333_v20, %v324_v17  ;;  %v375_v24 = vpack.c.bf16 %v331_v19, %v322_v16  ;;  %v344_v25 = vpop.permute.xlu0 %343  ;;  %399 = vmatprep.subr.bf16.mxu0 %v374_v14 }
 0x3a7   :  { %v350_v47 = vsel %vm82_vm7, %v344_v25, %v690_v6  ;;  %v351_v48 = vsel %vm82_vm7, %v691_v33, %v344_v25 }
 0x3a8   :  { %v335_v27 = vpop.permute.xlu1 %334  ;;  %400 = vmatpush1.bf16.msra.mxu0 %v373_v21  ;;  %592 = vmatpush3.bf16.msra.mxu1 %v375_v24 }
 0x3a9   :  { %v341_v28 = vsel %vm72_vm5, %v335_v27, %v685_v63  ;;  %v342_v29 = vsel %vm72_vm5, %v686_v62, %v335_v27  ;;  %401 = vmatprep.subr.bf16.mxu0 %v377_v26  ;;  %593 = vmatprep.subr.bf16.mxu1 %v709_v3 }
 0x3aa   :  { %v376_v30 = vpack.c.bf16 %v341_v28, %v905_v34  ;;  %v378_v31 = vpack.c.bf16 %v342_v29, %v911_v36  ;;  %v699_v32 = vpop.permute.xlu0 %698  ;;  %v349_v34 = vsel %vm82_vm7, %v690_v6, %v691_v33 }
 0x3ab   :  { %v701_v35 = vunpack.i.h.bf16 %v699_v32  ;;  %v700_v37 = vunpack.i.l.bf16 %v699_v32 }
 0x3ac   :  { %v694_v38 = vpop.permute.xlu1 %693  ;;  %402 = vmatpush1.bf16.msra.mxu0 %v376_v30  ;;  %594 = vmatpush3.bf16.msra.mxu1 %v378_v31 }
 0x3ad   :  { %v367_v39 = vsel %vm102_vm9, %v700_v37, %v701_v35  ;;  %v696_v41 = vunpack.i.h.bf16 %v694_v38  ;;  %v695_v42 = vunpack.i.l.bf16 %v694_v38  ;;  %595 = vmatprep.subr.bf16.mxu1 %v709_v3  ;;  %v724_v38 = vmov 3  }
 0x3ae   :  { %v383_v43 = vpack.c.bf16 %v721_v23, %v367_v39  ;;  %703 = vset.pattern.permute.xlu1 %v724_v38 }
 0x3af   :  { %v358_v36 = vsel %vm92_vm6, %v695_v42, %v696_v41 }
 0x3b0   :  { %v353_v45 = vpop.permute.xlu1 %352  ;;  %v380_v46 = vpack.c.bf16 %v358_v36, %v349_v34  ;;  %v392_v53 = vand.u32 %v383_v43, %v865_v22 }
 0x3b1   :  { %v359_v49 = vsel %vm92_vm6, %v353_v45, %v695_v42  ;;  %v360_v50 = vsel %vm92_vm6, %v696_v41, %v353_v45 }
 0x3b2   :  { %v379_v51 = vpack.c.bf16 %v359_v49, %v350_v47  ;;  %v381_v52 = vpack.c.bf16 %v360_v50, %v351_v48  ;;  %403 = vmatprep.subr.bf16.mxu0 %v380_v46 }
 0x3b4   :  { %v362_v54 = vpop.permute.xlu1 %361  ;;  %404 = vmatpush1.bf16.msra.mxu0 %v379_v51  ;;  %596 = vmatpush3.bf16.msra.mxu1 %v381_v52 }
 0x3b5   :  { %v368_v55 = vsel %vm102_vm9, %v362_v54, %v700_v37  ;;  %v369_v56 = vsel %vm102_vm9, %v701_v35, %v362_v54  ;;  %405 = vmatprep.subr.bf16.mxu0 %v392_v53  ;;  %597 = vmatprep.subr.bf16.mxu1 %v709_v3 }
 0x3b6   :  { %v382_v57 = vpack.c.bf16 %v721_v23, %v368_v55  ;;  %v384_v58 = vpack.c.bf16 %v721_v23, %v369_v56 }
 0x3b8   :  { %v389_v59 = vand.u32 %v382_v57, %v865_v22  ;;  %v395_v60 = vand.u32 %v384_v58, %v865_v22 }
 0x3ba   :  { %406 = vmatpush1.bf16.msra.mxu0 %v389_v59  ;;  %598 = vmatpush3.bf16.msra.mxu1 %v395_v60 }
 0x3bd   :  { %561 = vmatmul.mubr.msk.bf16.vlgmr.msra.gmra.mrb[4].mxu0 %vm121_vm11, %v560_v61  ;;  %600 = vmatmul.mubr.msk.bf16.vlgmr.msra.gmra.mrb[4].mxu1 %vm121_vm11, %v560_v61 }
 0x490   :  { %v431_v9 = vpop.f32.mrb[4].mxu0  ;;  %v472_v3 = vpop.f32.mrb[4].mxu1 }
 0x491   :  { %vm478_vm15 = vcmp.ge.f32.partialorder %v431_v9, 0.0  ;;  %v481_v62 = vmul.f32 0.01, %v431_v9  ;;  %vm480_vm0 = vcmp.ge.f32.partialorder %v472_v3, 0.0  ;;  %v483_v23 = vmul.f32 0.01, %v472_v3 }
 0x492   :  { %v433_v63 = vpop.f32.mrb[5].mxu0  ;;  %v601_v4 = vpop.f32.mrb[5].mxu1 }
 0x493   :  { %v484_v5 = vsel %vm478_vm15, %v431_v9, %v481_v62  ;;  %v486_v22 = vsel %vm480_vm0, %v472_v3, %v483_v23  ;;  %vm479_vm1 = vcmp.ge.f32.partialorder %v433_v63, 0.0  ;;  %v482_v8 = vmul.f32 0.01, %v433_v63  ;;  %v435_v10 = vpop.f32.mrb[6].mxu0  ;;  %v475_v11 = vpop.f32.mrb[6].mxu1 }
 0x494   :  { %v436_v12 = vpop.f32.mrb[7].mxu0  ;;  %v602_v13 = vpop.f32.mrb[7].mxu1  ;;  %v487_v14 = vmul.f32 %v484_v5, %v886_v40  ;;  %v489_v17 = vmul.f32 %v486_v22, %v890_v7 }
 0x495   :  { %v485_v15 = vsel %vm479_vm1, %v433_v63, %v482_v8 }
 0x496   :  { %v488_v16 = vmul.f32 %v485_v15, %v888_v44  ;;  %v494_v19 = vmul.f32 %v487_v14, %v484_v5  ;;  %v496_v25 = vmul.f32 %v489_v17, %v486_v22 }
 0x498   :  { %v490_v20 = vadd.f32 %v488_v16, %v487_v14  ;;  %v495_v21 = vmul.f32 %v488_v16, %v485_v15 }
 0x49a   :  { %v491_v24 = vadd.f32 %v490_v20, %v489_v17  ;;  %v497_v26 = vadd.f32 %v495_v21, %v494_v19 }
 0x49c   :  { %492 = vadd.xlane.f32.xlu0 %v491_v24  ;;  %v498_v27 = vadd.f32 %v497_v26, %v496_v25 }
 0x49e   :  { %499 = vadd.xlane.f32.xlu1 %v498_v27 }
 0x4b2   :  { %513 = vrot.lane.b32.xlu0 %v898_v18, %s723_s2 }
 0x529   :  { %v493_v28 = vpop.xlane.xlu0 %492 }
 0x52a   :  { %v501_v29 = vrot.slane %v493_v28, 4 }
 0x52b   :  { %v500_v40 = vpop.xlane.xlu1 %499 }
 0x52c   :  { %v502_v30 = vadd.f32 %v501_v29, %v493_v28  ;;  %v503_v31 = vrot.slane %v500_v40, 4 }
 0x52d   :  { %v514_v39 = vpop.permute.xlu0 %513 }
 0x52e   :  { %v505_v44 = vmul.f32 0.001953125, %v502_v30  ;;  %v504_v32 = vadd.f32 %v503_v31, %v500_v40 }
 0x530   :  { %v507_v7 = vmul.f32 %v505_v44, %v505_v44  ;;  %v506_v33 = vmul.f32 0.001953125, %v504_v32 }
 0x532   :  { %v508_v6 = vsub.f32 %v506_v33, %v507_v7 }
 0x534   :  { %v509_v35 = vmax.f32 %v508_v6, 0.0 }
 0x536   :  { %v510_v37 = vadd.f32 1e-05, %v509_v35 }
 0x538   :  { %707 = vrsqrt.f32 %v510_v37 }
 0x542   :  { %v708_v41 = vpop.eup %707 }
 0x543   :  { %v516_v42 = vmul.f32 %v708_v41, %v514_v39 }
 0x545   :  { %v517_v34 = vmul.f32 %v516_v42, %v505_v44  ;;  %525 = vperm.xlu0 %702, %v516_v42  }
 0x547   :  { %519 = vrot.lane.b32.xlu1 %v517_v34, %s725_s8 }
 0x549   :  { %704 = vset.pattern.permute.xlu0 %v724_v38 }
 0x5b9   :  { %v520_v36 = vpop.permute.xlu1 %519 }
 0x5ba   :  { %v522_v43 = vsub.f32 %v898_v18, %v520_v36 }
 0x5bc   :  { %533 = vperm.xlu1 %703, %v522_v43  }
 0x5c4   :  { %v526_v45 = vpop.permute.xlu0 %525 }
 0x5c5   :  { %v528_v46 = vmul.f32 %v526_v45, %v484_v5  ;;  %v529_v47 = vmul.f32 %v526_v45, %v485_v15  ;;  %v530_v48 = vmul.f32 %v526_v45, %v486_v22 }
 0x63b   :  { %v534_v49 = vpop.permute.xlu1 %533 }
 0x63c   :  { %v536_v50 = vadd.f32 %v534_v49, %v528_v46  ;;  %v537_v51 = vadd.f32 %v534_v49, %v529_v47  ;;  %v538_v52 = vadd.f32 %v534_v49, %v530_v48 }
 0x63e   :  { %v539_v53 = vadd.f32 %v536_v50, %v759_v1  ;;  %v540_v54 = vadd.f32 %v537_v51, %v764_v2  ;;  %v541_v55 = vadd.f32 %v538_v52, %v754_v0 }
 0x640   :  { %vm542_vm2 = vcmp.ge.f32.partialorder %v539_v53, 0.0  ;;  %vm543_vm3 = vcmp.ge.f32.partialorder %v540_v54, 0.0  ;;  %vm544_vm4 = vcmp.ge.f32.partialorder %v541_v55, 0.0  ;;  %v545_v56 = vmul.f32 0.01, %v539_v53 }
 0x641   :  { %v546_v18 = vmul.f32 0.01, %v540_v54  ;;  %v547_v57 = vmul.f32 0.01, %v541_v55 }
 0x642   :  { %v548_v58 = vsel %vm542_vm2, %v539_v53, %v545_v56 }
 0x643   :  { %v549_v59 = vsel %vm543_vm3, %v540_v54, %v546_v18  ;;  %v550_v60 = vsel %vm544_vm4, %v541_v55, %v547_v57  ;;  %551 = vst [vmem:[%s1028_s4] sm:$0xff] %v548_v58 }
 0x644   :  { %552 = vst [vmem:[%s1028_s4 + $0x8] sm:$0xff] %v549_v59  ;;  %553 = vst [vmem:[%s1028_s4 + $0x10] sm:$0xff] %v550_v60 }

</bundles_post_ra>
